<compile_context>
chip_gen: v5e
topology: v5e:2x2
jax: 0.10.0
libtpu: 0.0.40
codegen_flags: <defaults>
</compile_context>

<pallas_src>
import functools

import jax
import jax.numpy as jnp
from jax import lax
from jax.experimental import pallas as pl
from jax.experimental.pallas import tpu as pltpu

BN_EPS = 1e-5


def _round_up(x, m):
    return ((x + m - 1) // m) * m


# ------------------------- Pallas kernels -------------------------

def _stack_kernel(*refs, n_layers, relu_flags):
    """Fused chain of 1x1-conv (+folded BN) (+ReLU) layers on one row tile."""
    x_ref = refs[0]
    o_ref = refs[-1]
    y = x_ref[...]
    for i in range(n_layers):
        w = refs[1 + 2 * i][...]
        b = refs[2 + 2 * i][...]
        y = jnp.dot(y, w, preferred_element_type=jnp.float32) + b
        if relu_flags[i]:
            y = jnp.maximum(y, 0.0)
    o_ref[...] = y.astype(o_ref.dtype)


def fused_stack(x, layers, *, tm=1024):
    """x: (M, Cin) f32; layers: [(w (ci,co), b (co,), relu_bool), ...] -> (M, Cout)."""
    M, cin = x.shape
    cout = layers[-1][0].shape[1]
    tm = min(tm, _round_up(max(M, 8), 8))
    Mp = _round_up(M, tm)
    xp = jnp.pad(x, ((0, Mp - M), (0, 0))) if Mp != M else x

    args = [xp]
    in_specs = [pl.BlockSpec((tm, cin), lambda i: (i, 0))]
    relu_flags = []
    for (w, b, relu) in layers:
        args += [w, b.reshape(1, -1)]
        in_specs += [pl.BlockSpec(w.shape, lambda i: (0, 0)),
                     pl.BlockSpec((1, b.shape[0]), lambda i: (0, 0))]
        relu_flags.append(bool(relu))

    out = pl.pallas_call(
        functools.partial(_stack_kernel, n_layers=len(layers),
                          relu_flags=tuple(relu_flags)),
        out_shape=jax.ShapeDtypeStruct((Mp, cout), jnp.float32),
        grid=(Mp // tm,),
        in_specs=in_specs,
        out_specs=pl.BlockSpec((tm, cout), lambda i: (i, 0)),
        compiler_params=pltpu.CompilerParams(dimension_semantics=("parallel",)),
    )(*args)
    return out[:M] if Mp != M else out


def _attn_combine_kernel(fai_ref, pa_ref, w1_ref, b1_ref, w2_ref, b2_ref,
                         o_ref, acc_ref, *, channel, n_near):
    """AttentionInPnts combine for one (batch, center-tile, neighbour) grid step."""
    C = channel
    k = pl.program_id(2)

    @pl.when(k == 0)
    def _():
        acc_ref[...] = jnp.zeros_like(acc_ref)

    fai = fai_ref[0]                 # (TP, C)
    pa = pa_ref[0, 0]                # (TP, 2C): psi | alpha for neighbour k
    psi = pa[:, :C]
    alpha = pa[:, C:]

    # gamma MLP on (fai - psi)   (broadcast over K handled by the grid, no PKxP matmul)
    d = fai - psi
    h = jnp.dot(d, w1_ref[...], preferred_element_type=jnp.float32) + b1_ref[...]
    h = jnp.maximum(h, 0.0)
    g = jnp.dot(h, w2_ref[...], preferred_element_type=jnp.float32) + b2_ref[...]

    # softmax over channels; fold the C * (1/K) scale into the EUP reciprocal
    g = g - jnp.max(g, axis=-1, keepdims=True)
    e = jnp.exp(g)
    coef = pl.reciprocal(jnp.sum(e, axis=-1, keepdims=True), approx=True)
    coef = coef * (float(C) / float(n_near))
    acc_ref[...] += (e * coef) * alpha

    @pl.when(k == n_near - 1)
    def _():
        o_ref[0] = acc_ref[...].astype(o_ref.dtype)


def attention_combine(fai_xi, psialpha_kp, gw1, gb1, gw2, gb2, *, n_near):
    """fai_xi: (B,P,C); psialpha_kp: (B,K,P,2C) (psi|alpha concat). Returns (B,P,C)."""
    B, P, C = fai_xi.shape
    K = n_near
    H = gw1.shape[1]
    TP = P
    for cand in (256, 128, 64, 32, 16, 8):
        if P % cand == 0:
            TP = cand
            break

    kern = functools.partial(_attn_combine_kernel, channel=C, n_near=K)
    return pl.pallas_call(
        kern,
        out_shape=jax.ShapeDtypeStruct((B, P, C), jnp.float32),
        grid=(B, P // TP, K),
        in_specs=[
            pl.BlockSpec((1, TP, C), lambda b, p, k: (b, p, 0)),
            pl.BlockSpec((1, 1, TP, 2 * C), lambda b, p, k: (b, k, p, 0)),
            pl.BlockSpec((C, H), lambda b, p, k: (0, 0)),
            pl.BlockSpec((1, H), lambda b, p, k: (0, 0)),
            pl.BlockSpec((H, C), lambda b, p, k: (0, 0)),
            pl.BlockSpec((1, C), lambda b, p, k: (0, 0)),
        ],
        out_specs=pl.BlockSpec((1, TP, C), lambda b, p, k: (b, p, 0)),
        scratch_shapes=[pltpu.VMEM((TP, C), jnp.float32)],
        compiler_params=pltpu.CompilerParams(
            dimension_semantics=("parallel", "parallel", "arbitrary")),
    )(fai_xi, psialpha_kp, gw1, gb1.reshape(1, H), gw2, gb2.reshape(1, C))


# ------------------------- plain-JAX glue (sampling / grouping) -------------------------

def get_neighbor_index(xyz, k):
    # TODO(synk): utils.get_neighbor_index source not provided; assumed the common
    # definition (k nearest neighbours by squared euclidean distance, self excluded).
    inner = jnp.einsum('bnd,bmd->bnm', xyz, xyz)
    sq = jnp.sum(xyz * xyz, axis=-1)
    dist = -2.0 * inner + sq[:, :, None] + sq[:, None, :]
    return jnp.argsort(dist, axis=-1)[:, :, 1:k + 1]


def farthest_point_sample(xyz, n_samples):
    # NOTE: torch seeds FPS with randint; fixed to point 0 for determinism.
    B, N, _ = xyz.shape

    def body(i, state):
        centroids, distance, farthest = state
        centroids = centroids.at[:, i].set(farthest)
        centroid = jnp.take_along_axis(xyz, farthest[:, None, None], axis=1)  # (B,1,3)
        dist = jnp.sum((xyz - centroid) ** 2, axis=-1)
        distance = jnp.minimum(distance, dist)
        farthest = jnp.argmax(distance, axis=-1).astype(jnp.int32)
        return centroids, distance, farthest

    init = (jnp.zeros((B, n_samples), jnp.int32),
            jnp.full((B, N), 1e10, jnp.float32),
            jnp.zeros((B,), jnp.int32))
    centroids, _, _ = lax.fori_loop(0, n_samples, body, init)
    return centroids


def index_points(points, idx):
    return jax.vmap(lambda p, i: p[i])(points, idx)


# ------------------------- parameters (deterministic init, BN folded) -------------------------

def _fold_conv_bn(w, b, gamma, beta, mean, var):
    scale = gamma / jnp.sqrt(var + BN_EPS)
    w_f = w * scale[:, None]
    b_f = (b - mean) * scale + beta
    return w_f.T, b_f        # (Cin, Cout), (Cout,)


def _init_conv_bn(key, cin, cout):
    k = jax.random.split(key, 6)
    w = 0.1 * jax.random.normal(k[0], (cout, cin), jnp.float32)
    b = 0.1 * jax.random.normal(k[1], (cout,), jnp.float32)
    gamma = jax.random.uniform(k[2], (cout,), jnp.float32, 0.5, 1.5)
    beta = 0.1 * jax.random.normal(k[3], (cout,), jnp.float32)
    mean = 0.1 * jax.random.normal(k[4], (cout,), jnp.float32)
    var = jax.random.uniform(k[5], (cout,), jnp.float32, 0.5, 1.5)
    return _fold_conv_bn(w, b, gamma, beta, mean, var)


def _init_conv(key, cin, cout):
    k = jax.random.split(key, 2)
    w = 0.1 * jax.random.normal(k[0], (cout, cin), jnp.float32)
    b = 0.1 * jax.random.normal(k[1], (cout,), jnp.float32)
    return w.T, b


def _init_fc_conv2d(key, channels):
    # TODO(synk): exact utils.full_connected_conv2d structure unknown; assumed
    # hidden Conv1x1 + BN(eval) + ReLU, then a bare Conv1x1 output layer (dropout off).
    k1, k2 = jax.random.split(key)
    return dict(hidden=_init_conv_bn(k1, channels[0], channels[1]),
                out=_init_conv(k2, channels[1], channels[2]))


def init_set_abstraction_params(key, in_channel, mlp):
    keys = jax.random.split(key, len(mlp) + 4)
    layers = []
    last = in_channel
    for i, cout in enumerate(mlp):
        layers.append(_init_conv_bn(keys[i], last, cout))
        last = cout
    att = {}
    for j, name in enumerate(['fai', 'psi', 'alpha', 'gamma']):
        att[name] = _init_fc_conv2d(keys[len(mlp) + j], [last, last + 8, last])
    return dict(mlp=layers, att=att)


# ------------------------- SetAbstraction forward -------------------------

def set_abstraction_forward(params, xyz, eula, near, meta, fea,
                            *, n_center, n_near, group_all):
    B, N, _ = xyz.shape
    c_last = params['mlp'][-1][0].shape[1]
    trunk = [(w, b, True) for (w, b) in params['mlp']]

    if group_all:
        # sample_and_group_all branch
        center_xyz = jnp.zeros((B, 1, 3), jnp.float32)
        g_fea = jnp.concatenate(
            [xyz, eula, jnp.tile(near, (1, 1, 2)), jnp.tile(meta, (1, 1, 2)), fea], axis=-1)
        center_fea = jnp.max(fea, axis=1, keepdims=True)
        h = fused_stack(g_fea.reshape(B * N, -1), trunk).reshape(B, N, c_last)
        # TODO(synk): group_all max-pool kept in plain JAX (path not exercised in __main__).
        pooled = jnp.max(h, axis=1, keepdims=True)
        new_fea = jnp.concatenate([center_fea, pooled], axis=-1)
        return center_xyz, None, None, None, new_fea

    P, K = n_center, n_near
    d_near = near.shape[-1]
    d_meta = meta.shape[-1]

    # ---- sample_and_group (data-dependent gathers stay in plain JAX) ----
    idx_all = get_neighbor_index(xyz, K)                 # (B, N, K)
    fps_idx = farthest_point_sample(xyz, P)              # (B, P)
    center_xyz = index_points(xyz, fps_idx)
    center_eula = index_points(eula, fps_idx)
    center_near = index_points(near, fps_idx)
    center_meta = index_points(meta, fps_idx)
    center_fea = index_points(fea, fps_idx)              # (B, P, d_fea)
    idx = index_points(idx_all, fps_idx)                 # (B, P, K)

    # neighbour-major (B, K, P, ...) layout so the attention kernel streams one k-slab/step
    idx_kp = jnp.transpose(idx, (0, 2, 1))               # (B, K, P)
    g_xyz = index_points(xyz, idx_kp)
    g_eula = index_points(eula, idx_kp)
    g_near = index_points(near, idx_kp)
    g_meta = index_points(meta, idx_kp)
    g_fea_pts = index_points(fea, idx_kp)
    g_xyz_rel = g_xyz - center_xyz[:, None, :, :]
    g_eula_rel = g_eula - center_eula[:, None, :, :]
    g_near_cat = jnp.concatenate(
        [g_near, jnp.broadcast_to(center_near[:, None, :, :], (B, K, P, d_near))], axis=-1)
    g_meta_cat = jnp.concatenate(
        [g_meta, jnp.broadcast_to(center_meta[:, None, :, :], (B, K, P, d_meta))], axis=-1)
    g_fea = jnp.concatenate(
        [g_xyz_rel, g_eula_rel, g_near_cat, g_meta_cat, g_fea_pts], axis=-1)  # (B,K,P,Cin)
    cin = g_fea.shape[-1]

    # center features for attention: zero xyz/eula, duplicated near/meta, raw fea
    center_fea_att = jnp.concatenate(
        [jnp.zeros((B, P, 3), jnp.float32),
         jnp.zeros((B, P, 3), jnp.float32),
         jnp.tile(center_near, (1, 1, 2)),
         jnp.tile(center_meta, (1, 1, 2)),
         center_fea], axis=-1)                            # (B, P, Cin)

    att = params['att']
    # merge psi & alpha heads: shared trunk input, concatenated hidden, block-diag out
    pw_h, pb_h = att['psi']['hidden']
    po_w, po_b = att['psi']['out']
    aw_h, ab_h = att['alpha']['hidden']
    ao_w, ao_b = att['alpha']['out']
    H = pw_h.shape[1]
    wh_cat = jnp.concatenate([pw_h, aw_h], axis=1)        # (C, 2H)
    bh_cat = jnp.concatenate([pb_h, ab_h], axis=0)        # (2H,)
    wo_blk = jnp.zeros((2 * H, 2 * c_last), jnp.float32)
    wo_blk = wo_blk.at[:H, :c_last].set(po_w).at[H:, c_last:].set(ao_w)
    bo_cat = jnp.concatenate([po_b, ao_b], axis=0)        # (2C,)

    # x_j path: trunk + psi|alpha heads in ONE fused kernel; x_j never touches HBM.
    xj_layers = trunk + [(wh_cat, bh_cat, True), (wo_blk, bo_cat, False)]
    psialpha = fused_stack(g_fea.reshape(B * K * P, cin), xj_layers)
    psialpha = psialpha.reshape(B, K, P, 2 * c_last)

    # x_i path: trunk + fai head in ONE fused kernel.
    fw_h, fb_h = att['fai']['hidden']
    fo_w, fo_b = att['fai']['out']
    xi_layers = trunk + [(fw_h, fb_h, True), (fo_w, fo_b, False)]
    fai_xi = fused_stack(center_fea_att.reshape(B * P, cin), xi_layers)
    fai_xi = fai_xi.reshape(B, P, c_last)

    # AttentionInPnts combine (gamma MLP + softmax + neighbour mean)
    gw1, gb1 = att['gamma']['hidden']
    gw2, gb2 = att['gamma']['out']
    y_i = attention_combine(fai_xi, psialpha, gw1, gb1, gw2, gb2, n_near=K)  # (B,P,C)

    new_fea = jnp.concatenate([center_fea, y_i], axis=-1)   # (B, P, d_fea + C)
    return center_xyz, center_eula, center_near, center_meta, new_fea


# ------------------------- demo -------------------------

if __name__ == "__main__":
    key = jax.random.PRNGKey(0)
    B, N = 2, 16
    n_center, n_near = 8, 4
    d_near, d_meta, d_fea = 2, 4, 8
    mlp = [16, 32]
    in_channel = 3 + 3 + 2 * d_near + 2 * d_meta + d_fea   # 26

    ks = jax.random.split(key, 6)
    xyz = jax.random.normal(ks[0], (B, N, 3), jnp.float32)
    eula = jax.random.normal(ks[1], (B, N, 3), jnp.float32)
    near = jax.random.normal(ks[2], (B, N, d_near), jnp.float32)
    meta = jax.random.normal(ks[3], (B, N, d_meta), jnp.float32)
    fea = jax.random.normal(ks[4], (B, N, d_fea), jnp.float32)

    params = init_set_abstraction_params(ks[5], in_channel, mlp)

    out = set_abstraction_forward(params, xyz, eula, near, meta, fea,
                                  n_center=n_center, n_near=n_near, group_all=False)
    out = jax.block_until_ready(out)
    center_xyz, center_eula, center_near, center_meta, new_fea = out
    assert center_xyz.shape == (B, n_center, 3)
    assert new_fea.shape == (B, n_center, d_fea + mlp[-1])
    assert bool(jnp.all(jnp.isfinite(new_fea)))
    print("KERNEL_OK")
</pallas_src>

<mosaic_0001>
module attributes {stable_mosaic.version = 11 : i64} {
  func.func @_stack_kernel(%arg0: i32, %arg1: memref<64x26xf32, #tpu.memory_space<vmem>>, %arg2: memref<26x16xf32, #tpu.memory_space<vmem>>, %arg3: memref<1x16xf32, #tpu.memory_space<vmem>>, %arg4: memref<16x32xf32, #tpu.memory_space<vmem>>, %arg5: memref<1x32xf32, #tpu.memory_space<vmem>>, %arg6: memref<32x80xf32, #tpu.memory_space<vmem>>, %arg7: memref<1x80xf32, #tpu.memory_space<vmem>>, %arg8: memref<80x64xf32, #tpu.memory_space<vmem>>, %arg9: memref<1x64xf32, #tpu.memory_space<vmem>>, %arg10: memref<64x64xf32, #tpu.memory_space<vmem>>) attributes {dimension_semantics = [#tpu.dimension_semantics<parallel>], iteration_bounds = array<i64: 1>, scalar_prefetch = 0 : i64, scratch_operands = 0 : i64, tpu.core_type = #tpu.core_type<tc>, window_params = [{transform_indices = @transform_0, window_bounds = array<i64: 64, 26>}, {pipeline_mode = #tpu.pipeline_mode<synchronous>, transform_indices = @transform_1, window_bounds = array<i64: 26, 16>}, {pipeline_mode = #tpu.pipeline_mode<synchronous>, transform_indices = @transform_2, window_bounds = array<i64: 1, 16>}, {pipeline_mode = #tpu.pipeline_mode<synchronous>, transform_indices = @transform_3, window_bounds = array<i64: 16, 32>}, {pipeline_mode = #tpu.pipeline_mode<synchronous>, transform_indices = @transform_4, window_bounds = array<i64: 1, 32>}, {pipeline_mode = #tpu.pipeline_mode<synchronous>, transform_indices = @transform_5, window_bounds = array<i64: 32, 80>}, {pipeline_mode = #tpu.pipeline_mode<synchronous>, transform_indices = @transform_6, window_bounds = array<i64: 1, 80>}, {pipeline_mode = #tpu.pipeline_mode<synchronous>, transform_indices = @transform_7, window_bounds = array<i64: 80, 64>}, {pipeline_mode = #tpu.pipeline_mode<synchronous>, transform_indices = @transform_8, window_bounds = array<i64: 1, 64>}, {transform_indices = @transform_9, window_bounds = array<i64: 64, 64>}]} {
    %c0 = arith.constant 0 : index
    %c0_0 = arith.constant 0 : index
    %0 = vector.load %arg1[%c0, %c0_0] : memref<64x26xf32, #tpu.memory_space<vmem>>, vector<64x26xf32>
    %c0_1 = arith.constant 0 : index
    %c0_2 = arith.constant 0 : index
    %1 = vector.load %arg2[%c0_1, %c0_2] : memref<26x16xf32, #tpu.memory_space<vmem>>, vector<26x16xf32>
    %c0_3 = arith.constant 0 : index
    %c0_4 = arith.constant 0 : index
    %2 = vector.load %arg3[%c0_3, %c0_4] : memref<1x16xf32, #tpu.memory_space<vmem>>, vector<1x16xf32>
    %cst = arith.constant dense<0.000000e+00> : vector<64x16xf32>
    %3 = tpu.matmul %0, %1, %cst {dimension_numbers = #tpu.dot_dimension_numbers<[1], [0], [0], [1], [0, 0, 1, 1], [], []>} : vector<64x26xf32>, vector<26x16xf32>, vector<64x16xf32> -> vector<64x16xf32>
    %4 = vector.broadcast %2 : vector<1x16xf32> to vector<64x16xf32>
    %5 = arith.addf %3, %4 : vector<64x16xf32>
    %cst_5 = arith.constant 0.000000e+00 : f32
    %6 = vector.broadcast %cst_5 : f32 to vector<64x16xf32>
    %7 = arith.maximumf %5, %6 : vector<64x16xf32>
    %c0_6 = arith.constant 0 : index
    %c0_7 = arith.constant 0 : index
    %8 = vector.load %arg4[%c0_6, %c0_7] : memref<16x32xf32, #tpu.memory_space<vmem>>, vector<16x32xf32>
    %c0_8 = arith.constant 0 : index
    %c0_9 = arith.constant 0 : index
    %9 = vector.load %arg5[%c0_8, %c0_9] : memref<1x32xf32, #tpu.memory_space<vmem>>, vector<1x32xf32>
    %cst_10 = arith.constant dense<0.000000e+00> : vector<64x32xf32>
    %10 = tpu.matmul %7, %8, %cst_10 {dimension_numbers = #tpu.dot_dimension_numbers<[1], [0], [0], [1], [0, 0, 1, 1], [], []>} : vector<64x16xf32>, vector<16x32xf32>, vector<64x32xf32> -> vector<64x32xf32>
    %11 = vector.broadcast %9 : vector<1x32xf32> to vector<64x32xf32>
    %12 = arith.addf %10, %11 : vector<64x32xf32>
    %cst_11 = arith.constant 0.000000e+00 : f32
    %13 = vector.broadcast %cst_11 : f32 to vector<64x32xf32>
    %14 = arith.maximumf %12, %13 : vector<64x32xf32>
    %c0_12 = arith.constant 0 : index
    %c0_13 = arith.constant 0 : index
    %15 = vector.load %arg6[%c0_12, %c0_13] : memref<32x80xf32, #tpu.memory_space<vmem>>, vector<32x80xf32>
    %c0_14 = arith.constant 0 : index
    %c0_15 = arith.constant 0 : index
    %16 = vector.load %arg7[%c0_14, %c0_15] : memref<1x80xf32, #tpu.memory_space<vmem>>, vector<1x80xf32>
    %cst_16 = arith.constant dense<0.000000e+00> : vector<64x80xf32>
    %17 = tpu.matmul %14, %15, %cst_16 {dimension_numbers = #tpu.dot_dimension_numbers<[1], [0], [0], [1], [0, 0, 1, 1], [], []>} : vector<64x32xf32>, vector<32x80xf32>, vector<64x80xf32> -> vector<64x80xf32>
    %18 = vector.broadcast %16 : vector<1x80xf32> to vector<64x80xf32>
    %19 = arith.addf %17, %18 : vector<64x80xf32>
    %cst_17 = arith.constant 0.000000e+00 : f32
    %20 = vector.broadcast %cst_17 : f32 to vector<64x80xf32>
    %21 = arith.maximumf %19, %20 : vector<64x80xf32>
    %c0_18 = arith.constant 0 : index
    %c0_19 = arith.constant 0 : index
    %22 = vector.load %arg8[%c0_18, %c0_19] : memref<80x64xf32, #tpu.memory_space<vmem>>, vector<80x64xf32>
    %c0_20 = arith.constant 0 : index
    %c0_21 = arith.constant 0 : index
    %23 = vector.load %arg9[%c0_20, %c0_21] : memref<1x64xf32, #tpu.memory_space<vmem>>, vector<1x64xf32>
    %cst_22 = arith.constant dense<0.000000e+00> : vector<64x64xf32>
    %24 = tpu.matmul %21, %22, %cst_22 {dimension_numbers = #tpu.dot_dimension_numbers<[1], [0], [0], [1], [0, 0, 1, 1], [], []>} : vector<64x80xf32>, vector<80x64xf32>, vector<64x64xf32> -> vector<64x64xf32>
    %25 = vector.broadcast %23 : vector<1x64xf32> to vector<64x64xf32>
    %26 = arith.addf %24, %25 : vector<64x64xf32>
    %c0_23 = arith.constant 0 : index
    %c0_24 = arith.constant 0 : index
    %27 = vector.load %arg10[%c0_23, %c0_24] : memref<64x64xf32, #tpu.memory_space<vmem>>, vector<64x64xf32>
    tpu.vector_store %arg10[%c0_23, %c0_24], %26 {strides = array<i32>} : memref<64x64xf32, #tpu.memory_space<vmem>>, vector<64x64xf32>,
    return
  }
  func.func @transform_0(%arg0: i32) -> (i32, i32) {
    %c0_i32 = arith.constant 0 : i32
    %c0_i32_0 = arith.constant 0 : i32
    return %arg0, %c0_i32 : i32, i32
  }
  func.func @transform_1(%arg0: i32) -> (i32, i32) {
    %c0_i32 = arith.constant 0 : i32
    %c0_i32_0 = arith.constant 0 : i32
    %c0_i32_1 = arith.constant 0 : i32
    return %c0_i32, %c0_i32_0 : i32, i32
  }
  func.func @transform_2(%arg0: i32) -> (i32, i32) {
    %c0_i32 = arith.constant 0 : i32
    %c0_i32_0 = arith.constant 0 : i32
    %c0_i32_1 = arith.constant 0 : i32
    return %c0_i32, %c0_i32_0 : i32, i32
  }
  func.func @transform_3(%arg0: i32) -> (i32, i32) {
    %c0_i32 = arith.constant 0 : i32
    %c0_i32_0 = arith.constant 0 : i32
    %c0_i32_1 = arith.constant 0 : i32
    return %c0_i32, %c0_i32_0 : i32, i32
  }
  func.func @transform_4(%arg0: i32) -> (i32, i32) {
    %c0_i32 = arith.constant 0 : i32
    %c0_i32_0 = arith.constant 0 : i32
    %c0_i32_1 = arith.constant 0 : i32
    return %c0_i32, %c0_i32_0 : i32, i32
  }
  func.func @transform_5(%arg0: i32) -> (i32, i32) {
    %c0_i32 = arith.constant 0 : i32
    %c0_i32_0 = arith.constant 0 : i32
    %c0_i32_1 = arith.constant 0 : i32
    return %c0_i32, %c0_i32_0 : i32, i32
  }
  func.func @transform_6(%arg0: i32) -> (i32, i32) {
    %c0_i32 = arith.constant 0 : i32
    %c0_i32_0 = arith.constant 0 : i32
    %c0_i32_1 = arith.constant 0 : i32
    return %c0_i32, %c0_i32_0 : i32, i32
  }
  func.func @transform_7(%arg0: i32) -> (i32, i32) {
    %c0_i32 = arith.constant 0 : i32
    %c0_i32_0 = arith.constant 0 : i32
    %c0_i32_1 = arith.constant 0 : i32
    return %c0_i32, %c0_i32_0 : i32, i32
  }
  func.func @transform_8(%arg0: i32) -> (i32, i32) {
    %c0_i32 = arith.constant 0 : i32
    %c0_i32_0 = arith.constant 0 : i32
    %c0_i32_1 = arith.constant 0 : i32
    return %c0_i32, %c0_i32_0 : i32, i32
  }
  func.func @transform_9(%arg0: i32) -> (i32, i32) {
    %c0_i32 = arith.constant 0 : i32
    %c0_i32_0 = arith.constant 0 : i32
    return %arg0, %c0_i32 : i32, i32
  }
}

</mosaic_0001>

<bundles_post_ra>
// kernel: tpu_custom_call.1
= control target key start
LH: loop header
LB: loop body
LE: loop exit
PB: predicated region body
PF: predicated region fallthrough
CT: control target
= control target key end

     0   :  { %vm74_vm0 = vcmask 1041408   ;;  %s664_s0 = inlined_call_operand.vmem [shape: f32[64,26], index: 0, kind: input, shape index: {}]   ;;  %s665_s1 = inlined_call_operand.vmem [shape: f32[26,16], index: 1, kind: input, shape index: {}]   ;;  %s666_s2 = inlined_call_operand.vmem [shape: f32[1,16], index: 2, kind: input, shape index: {}]   ;;  %s667_s3 = inlined_call_operand.vmem [shape: f32[16,32], index: 3, kind: input, shape index: {}]   ;;  %s668_s4 = inlined_call_operand.vmem [shape: f32[1,32], index: 4, kind: input, shape index: {}]   ;;  %s669_s5 = inlined_call_operand.vmem [shape: f32[32,80], index: 5, kind: input, shape index: {}]   ;;  %s670_s6 = inlined_call_operand.vmem [shape: f32[1,80], index: 6, kind: input, shape index: {}]   ;;  %s671_s7 = inlined_call_operand.vmem [shape: f32[80,64], index: 7, kind: input, shape index: {}]   ;;  %s672_s8 = inlined_call_operand.vmem [shape: f32[1,64], index: 8, kind: input, shape index: {}]   ;;  %s673_s9 = inlined_call_operand.hbm [shape: f32[64,64], index: 9, kind: output, shape index: {}]  }
   0x1   :  { %v44_v0 = vld [vmem:[%s665_s1 + $0x18] sm:$0x3]  ;;  %v43_v1 = vld [vmem:[%s665_s1 + $0x10] sm:$0xff]  ;;  %v42_v2 = vld [vmem:[%s665_s1 + $0x8] sm:$0xff] }
   0x2   :  { %396 = vmatpush.msk.msra.mxu0 %vm74_vm0, %v44_v0  ;;  %v41_v3 = vld [vmem:[%s665_s1] sm:$0xff] }
   0x4   :  { %91 = vmatpush.msra.mxu0 %v43_v1 }
   0x5   :  { %14 = vsyncpa [#allocation3], 0  ;;  %v33_v4 = vld [vmem:[%s664_s0] sm:$0xff]  ;;  %vm49_vm1 = vcmask 211968   ;;  %v34_v5 = vld [vmem:[%s664_s0 + $0x8] sm:$0xff]  ;;  %vm133_vm2 = vcmask 130048  }
   0x6   :  { %92 = vmatpush.msra.mxu0 %v42_v2  ;;  %v35_v6 = vld [vmem:[%s664_s0 + $0x10] sm:$0xff]  ;;  %v36_v7 = vld [vmem:[%s664_s0 + $0x18] sm:$0xff]  ;;  %v37_v8 = vld [vmem:[%s664_s0 + $0x20] sm:$0xff]  ;;  %vm215_vm3 = vcmask 261120   ;;  %vm303_vm4 = vcmask 654336   ;;  %vm369_vm5 = vcmask 523264  }
   0x7   :  { %v38_v9 = vld [vmem:[%s664_s0 + $0x28] sm:$0xff]  ;;  %v39_v10 = vld [vmem:[%s664_s0 + $0x30] sm:$0xff]  ;;  %v40_v11 = vld [vmem:[%s664_s0 + $0x38] sm:$0xff]  ;;  %s384_s22 = sshll.u32 %s673_s9, 4  ;;  %s473_s1 = smov 128   ;;  %s385_s22 = int_to_ptr.hbm [resolvable:$true] %s384_s22 }
   0x8   :  { %93 = vmatpush.msra.mxu0 %v41_v3  ;;  %v128_v12 = vld [vmem:[%s667_s3 + $0x8] sm:$0xff]  ;;  %v127_v13 = vld [vmem:[%s667_s3] sm:$0xff]  ;;  %v210_v27 = vld [vmem:[%s669_s5 + $0x18] sm:$0xff] }
   0x9   :  { %397 = vmatmul.msk.f32.vlgmr.msra.gmra.mxu0 %vm49_vm1, %v33_v4  ;;  %172 = vmatpush.msra.mxu1 %v128_v12  ;;  %v442_v14 = vld [vmem:[%s666_s2] ss:$0 sm:$0xff]  ;;  %v209_v40 = vld [vmem:[%s669_s5 + $0x10] sm:$0xff]  ;;  %v208_v41 = vld [vmem:[%s669_s5 + $0x8] sm:$0xff] }
   0xa   :  { %252 = vmatpush.msra.mxu2 %v210_v27  ;;  %v207_v42 = vld [vmem:[%s669_s5] sm:$0xff]  ;;  %v298_v56 = vld [vmem:[%s671_s7 + $0x48] sm:$0xff]  ;;  %v296_v58 = vld [vmem:[%s671_s7 + $0x38] sm:$0xff] }
   0xb   :  { %173 = vmatpush.msra.mxu1 %v127_v13  ;;  %v443_v43 = vld [vmem:[%s668_s4] ss:$0 sm:$0xff]  ;;  %429 = vmatpush.msra.mxu3 %v298_v56  ;;  %v295_v61 = vld [vmem:[%s671_s7 + $0x30] sm:$0xff]  ;;  %v294_v63 = vld [vmem:[%s671_s7 + $0x28] sm:$0xff]  ;;  %s474_s4 = smov 8  }
   0xc   :  { %253 = vmatpush.msra.mxu2 %v209_v40  ;;  %v297_v57 = vld [vmem:[%s671_s7 + $0x40] sm:$0xff]  ;;  %v292_v1 = vld [vmem:[%s671_s7 + $0x18] sm:$0xff]  ;;  %v290_v12 = vld [vmem:[%s671_s7 + $0x8] sm:$0xff] }
   0xd   :  { %334 = vmatpush.msrb.mxu1 %v298_v56  ;;  %430 = vmatpush.msra.mxu3 %v297_v57  ;;  %v293_v0 = vld [vmem:[%s671_s7 + $0x20] sm:$0xff] }
   0xe   :  { %254 = vmatpush.msra.mxu2 %v208_v41  ;;  %v289_v13 = vld [vmem:[%s671_s7] sm:$0xff] }
   0xf   :  { %335 = vmatpush.msrb.mxu1 %v297_v57  ;;  %431 = vmatpush.msra.mxu3 %v296_v58 }
  0x10   :  { %255 = vmatpush.msra.mxu2 %v207_v42 }
  0x11   :  { %398 = vmatmul.msk.f32.gmra.mxu0 %vm49_vm1, %v34_v5  ;;  %336 = vmatpush.msrb.mxu1 %v296_v58 }
  0x12   :  { %432 = vmatpush.msra.mxu3 %v295_v61 }
  0x13   :  { %337 = vmatpush.msrb.mxu1 %v295_v61 }
  0x14   :  { %433 = vmatpush.msra.mxu3 %v294_v63 }
  0x15   :  { %338 = vmatpush.msrb.mxu1 %v294_v63 }
  0x16   :  { %434 = vmatpush.msra.mxu3 %v293_v0 }
  0x17   :  { %339 = vmatpush.msrb.mxu1 %v293_v0 }
  0x18   :  { %435 = vmatpush.msra.mxu3 %v292_v1 }
  0x19   :  { %399 = vmatmul.msk.f32.gmra.mxu0 %vm49_vm1, %v35_v6  ;;  %340 = vmatpush.msrb.mxu1 %v292_v1 }
  0x21   :  { %400 = vmatmul.msk.f32.gmra.mxu0 %vm49_vm1, %v36_v7 }
  0x29   :  { %401 = vmatmul.msk.f32.gmra.mxu0 %vm49_vm1, %v37_v8 }
  0x31   :  { %402 = vmatmul.msk.f32.gmra.mxu0 %vm49_vm1, %v38_v9 }
  0x39   :  { %403 = vmatmul.msk.f32.gmra.mxu0 %vm49_vm1, %v39_v10 }
  0x41   :  { %404 = vmatmul.msk.f32.gmra.mxu0 %vm49_vm1, %v40_v11  ;;  %v291_v11 = vld [vmem:[%s671_s7 + $0x10] sm:$0xff] }
  0x42   :  { %341 = vmatpush.msrb.mxu1 %v291_v11  ;;  %436 = vmatpush.msra.mxu3 %v291_v11 }
  0x44   :  { %342 = vmatpush.msrb.mxu1 %v290_v12  ;;  %437 = vmatpush.msra.mxu3 %v290_v12 }
  0x46   :  { %343 = vmatpush.msrb.mxu1 %v289_v13  ;;  %438 = vmatpush.msra.mxu3 %v289_v13 }
  0x86   :  { %v95_v15 = vpop.f32.mrf.mxu0 }
  0x87   :  { %v96_v16 = vadd.f32 %v442_v14, %v95_v15 }
  0x89   :  { %v119_v17 = vmax.f32 %v96_v16, 0.0 }
  0x8b   :  { %405 = vmatmul.msk.f32.vlgmr.msra.gmra.mxu1 %vm133_vm2, %v119_v17 }
  0x8e   :  { %v98_v18 = vpop.f32.mrf.mxu0 }
  0x8f   :  { %v99_v19 = vadd.f32 %v442_v14, %v98_v18 }
  0x91   :  { %v120_v20 = vmax.f32 %v99_v19, 0.0 }
  0x93   :  { %406 = vmatmul.msk.f32.gmra.mxu1 %vm133_vm2, %v120_v20 }
  0x96   :  { %v101_v21 = vpop.f32.mrf.mxu0 }
  0x97   :  { %v102_v22 = vadd.f32 %v442_v14, %v101_v21 }
  0x99   :  { %v121_v23 = vmax.f32 %v102_v22, 0.0 }
  0x9b   :  { %407 = vmatmul.msk.f32.gmra.mxu1 %vm133_vm2, %v121_v23 }
  0x9e   :  { %v104_v24 = vpop.f32.mrf.mxu0 }
  0x9f   :  { %v105_v25 = vadd.f32 %v442_v14, %v104_v24 }
  0xa1   :  { %v122_v26 = vmax.f32 %v105_v25, 0.0 }
  0xa3   :  { %408 = vmatmul.msk.f32.gmra.mxu1 %vm133_vm2, %v122_v26 }
  0xa6   :  { %v107_v28 = vpop.f32.mrf.mxu0 }
  0xa7   :  { %v108_v29 = vadd.f32 %v442_v14, %v107_v28 }
  0xa9   :  { %v123_v30 = vmax.f32 %v108_v29, 0.0 }
  0xab   :  { %409 = vmatmul.msk.f32.gmra.mxu1 %vm133_vm2, %v123_v30 }
  0xae   :  { %v110_v31 = vpop.f32.mrf.mxu0 }
  0xaf   :  { %v111_v32 = vadd.f32 %v442_v14, %v110_v31 }
  0xb1   :  { %v124_v33 = vmax.f32 %v111_v32, 0.0 }
  0xb3   :  { %410 = vmatmul.msk.f32.gmra.mxu1 %vm133_vm2, %v124_v33 }
  0xb6   :  { %v113_v34 = vpop.f32.mrf.mxu0 }
  0xb7   :  { %v114_v35 = vadd.f32 %v442_v14, %v113_v34 }
  0xb9   :  { %v125_v36 = vmax.f32 %v114_v35, 0.0 }
  0xbb   :  { %411 = vmatmul.msk.f32.gmra.mxu1 %vm133_vm2, %v125_v36 }
  0xbe   :  { %v116_v37 = vpop.f32.mrf.mxu0 }
  0xbf   :  { %v117_v38 = vadd.f32 %v442_v14, %v116_v37  ;;  %v444_v14 = vld [vmem:[%s670_s6] ss:$0 sm:$0xff] }
  0xc1   :  { %v126_v39 = vmax.f32 %v117_v38, 0.0 }
  0xc3   :  { %412 = vmatmul.msk.f32.gmra.mxu1 %vm133_vm2, %v126_v39  ;;  %v445_v39 = vld [vmem:[%s672_s8] ss:$0 sm:$0xff]  ;;  %s472_s8 = smov [#allocation2]  }
  0xc4   :  { %s382_s19 = sshll.u32 %s472_s8, 4  ;;  %s383_s19 = int_to_ptr.vmem [resolvable:$true] %s382_s19 }
 0x108   :  { %v175_v44 = vpop.f32.mrf.mxu1 }
 0x109   :  { %v176_v45 = vadd.f32 %v443_v43, %v175_v44 }
 0x10b   :  { %v199_v46 = vmax.f32 %v176_v45, 0.0 }
 0x10d   :  { %413 = vmatmul.msk.f32.vlgmr.msra.gmra.mxu2 %vm215_vm3, %v199_v46 }
 0x110   :  { %v178_v47 = vpop.f32.mrf.mxu1 }
 0x111   :  { %v179_v48 = vadd.f32 %v443_v43, %v178_v47 }
 0x113   :  { %v200_v49 = vmax.f32 %v179_v48, 0.0 }
 0x115   :  { %414 = vmatmul.msk.f32.gmra.mxu2 %vm215_vm3, %v200_v49 }
 0x118   :  { %v181_v50 = vpop.f32.mrf.mxu1 }
 0x119   :  { %v182_v51 = vadd.f32 %v443_v43, %v181_v50 }
 0x11b   :  { %v201_v52 = vmax.f32 %v182_v51, 0.0 }
 0x11d   :  { %415 = vmatmul.msk.f32.gmra.mxu2 %vm215_vm3, %v201_v52 }
 0x120   :  { %v184_v53 = vpop.f32.mrf.mxu1 }
 0x121   :  { %v185_v54 = vadd.f32 %v443_v43, %v184_v53 }
 0x123   :  { %v202_v55 = vmax.f32 %v185_v54, 0.0 }
 0x125   :  { %416 = vmatmul.msk.f32.gmra.mxu2 %vm215_vm3, %v202_v55 }
 0x128   :  { %v187_v59 = vpop.f32.mrf.mxu1 }
 0x129   :  { %v188_v60 = vadd.f32 %v443_v43, %v187_v59 }
 0x12b   :  { %v203_v62 = vmax.f32 %v188_v60, 0.0 }
 0x12d   :  { %417 = vmatmul.msk.f32.gmra.mxu2 %vm215_vm3, %v203_v62 }
 0x130   :  { %v190_v2 = vpop.f32.mrf.mxu1 }
 0x131   :  { %v191_v3 = vadd.f32 %v443_v43, %v190_v2 }
 0x133   :  { %v204_v4 = vmax.f32 %v191_v3, 0.0 }
 0x135   :  { %418 = vmatmul.msk.f32.gmra.mxu2 %vm215_vm3, %v204_v4 }
 0x138   :  { %v193_v5 = vpop.f32.mrf.mxu1 }
 0x139   :  { %v194_v6 = vadd.f32 %v443_v43, %v193_v5 }
 0x13b   :  { %v205_v7 = vmax.f32 %v194_v6, 0.0 }
 0x13d   :  { %419 = vmatmul.msk.f32.gmra.mxu2 %vm215_vm3, %v205_v7 }
 0x140   :  { %v196_v8 = vpop.f32.mrf.mxu1 }
 0x141   :  { %v197_v9 = vadd.f32 %v443_v43, %v196_v8 }
 0x143   :  { %v206_v10 = vmax.f32 %v197_v9, 0.0 }
 0x145   :  { %420 = vmatmul.msk.f32.gmra.mxu2 %vm215_vm3, %v206_v10 }
 0x190   :  { %v257_v15 = vpop.f32.mrf.mxu2 }
 0x191   :  { %v258_v16 = vadd.f32 %v444_v14, %v257_v15 }
 0x193   :  { %v281_v17 = vmax.f32 %v258_v16, 0.0 }
 0x195   :  { %421 = vmatmul.msk.f32.vlgmr.msrb.gmra.mxu1 %vm303_vm4, %v281_v17 }
 0x198   :  { %v260_v18 = vpop.f32.mrf.mxu2 }
 0x199   :  { %v261_v19 = vadd.f32 %v444_v14, %v260_v18 }
 0x19b   :  { %v282_v20 = vmax.f32 %v261_v19, 0.0 }
 0x19d   :  { %422 = vmatmul.msk.f32.vlgmr.msra.gmra.mxu3 %vm303_vm4, %v282_v20 }
 0x1a0   :  { %v263_v21 = vpop.f32.mrf.mxu2 }
 0x1a1   :  { %v264_v22 = vadd.f32 %v444_v14, %v263_v21 }
 0x1a3   :  { %v283_v23 = vmax.f32 %v264_v22, 0.0 }
 0x1a5   :  { %423 = vmatmul.msk.f32.gmra.mxu3 %vm303_vm4, %v283_v23 }
 0x1a8   :  { %v266_v24 = vpop.f32.mrf.mxu2 }
 0x1a9   :  { %v267_v25 = vadd.f32 %v444_v14, %v266_v24 }
 0x1ab   :  { %v284_v26 = vmax.f32 %v267_v25, 0.0 }
 0x1ad   :  { %424 = vmatmul.msk.f32.gmra.mxu3 %vm303_vm4, %v284_v26 }
 0x1b0   :  { %v269_v27 = vpop.f32.mrf.mxu2 }
 0x1b1   :  { %v270_v28 = vadd.f32 %v444_v14, %v269_v27 }
 0x1b3   :  { %v285_v29 = vmax.f32 %v270_v28, 0.0 }
 0x1b5   :  { %425 = vmatmul.msk.f32.gmra.mxu3 %vm303_vm4, %v285_v29 }
 0x1b8   :  { %v272_v30 = vpop.f32.mrf.mxu2 }
 0x1b9   :  { %v273_v31 = vadd.f32 %v444_v14, %v272_v30 }
 0x1bb   :  { %v286_v32 = vmax.f32 %v273_v31, 0.0 }
 0x1bd   :  { %426 = vmatmul.msk.f32.gmra.mxu3 %vm303_vm4, %v286_v32 }
 0x1c0   :  { %v275_v33 = vpop.f32.mrf.mxu2 }
 0x1c1   :  { %v276_v34 = vadd.f32 %v444_v14, %v275_v33 }
 0x1c3   :  { %v287_v35 = vmax.f32 %v276_v34, 0.0 }
 0x1c5   :  { %427 = vmatmul.msk.f32.gmra.mxu3 %vm303_vm4, %v287_v35 }
 0x1c8   :  { %v278_v36 = vpop.f32.mrf.mxu2 }
 0x1c9   :  { %v279_v37 = vadd.f32 %v444_v14, %v278_v36 }
 0x1cb   :  { %v288_v38 = vmax.f32 %v279_v37, 0.0 }
 0x1cd   :  { %428 = vmatmul.msk.f32.gmra.mxu3 %vm303_vm4, %v288_v38 }
 0x212   :  { %v345_v40 = vpop.f32.mrf.mxu1 }
 0x213   :  { %v346_v41 = vadd.f32 %v445_v39, %v345_v40 }
 0x215   :  { %370 = vst.msk [vmem:[#allocation2] sm:$0xff] %vm369_vm5, %v346_v41 }
 0x220   :  { %v348_v42 = vpop.f32.mrf.mxu3 }
 0x221   :  { %v349_v43 = vadd.f32 %v445_v39, %v348_v42 }
 0x223   :  { %371 = vst.msk [vmem:[#allocation2 + $0x8] sm:$0xff] %vm369_vm5, %v349_v43 }
 0x228   :  { %v351_v44 = vpop.f32.mrf.mxu3 }
 0x229   :  { %v352_v45 = vadd.f32 %v445_v39, %v351_v44 }
 0x22b   :  { %372 = vst.msk [vmem:[#allocation2 + $0x10] sm:$0xff] %vm369_vm5, %v352_v45 }
 0x230   :  { %v354_v46 = vpop.f32.mrf.mxu3 }
 0x231   :  { %v355_v47 = vadd.f32 %v445_v39, %v354_v46 }
 0x233   :  { %373 = vst.msk [vmem:[#allocation2 + $0x18] sm:$0xff] %vm369_vm5, %v355_v47 }
 0x238   :  { %v357_v48 = vpop.f32.mrf.mxu3 }
 0x239   :  { %v358_v49 = vadd.f32 %v445_v39, %v357_v48 }
 0x23b   :  { %374 = vst.msk [vmem:[#allocation2 + $0x20] sm:$0xff] %vm369_vm5, %v358_v49 }
 0x240   :  { %v360_v50 = vpop.f32.mrf.mxu3 }
 0x241   :  { %v361_v51 = vadd.f32 %v445_v39, %v360_v50 }
 0x243   :  { %375 = vst.msk [vmem:[#allocation2 + $0x28] sm:$0xff] %vm369_vm5, %v361_v51 }
 0x248   :  { %v363_v52 = vpop.f32.mrf.mxu3 }
 0x249   :  { %v364_v53 = vadd.f32 %v445_v39, %v363_v52 }
 0x24b   :  { %376 = vst.msk [vmem:[#allocation2 + $0x30] sm:$0xff] %vm369_vm5, %v364_v53 }
 0x250   :  { %v366_v54 = vpop.f32.mrf.mxu3 }
 0x251   :  { %v367_v55 = vadd.f32 %v445_v39, %v366_v54 }
 0x253   :  { %377 = vst.msk [vmem:[#allocation2 + $0x38] sm:$0xff] %vm369_vm5, %v367_v55 }
 0x254   :  { %390 = dma.vmem_to_hbm [thread:$0]  %s383_s19, 1024, %s385_s22, [#allocation3], %s473_s1, %s473_s1, %s474_s4  }
 0x255   :  { %470 = dma.done.wait [#allocation3], 1024  }
 0x256   :  { %471 = vsyncadd [#allocation3], 4294966272 }
 0x257   :  { %395 = vsyncpa [#allocation3], 1 }

</bundles_post_ra>
